<compile_context>
chip_gen: v7x
topology: tpu7x:2x2x1
jax: 0.10.0
libtpu: 0.0.40
codegen_flags: <defaults>
</compile_context>

<pallas_src>
import math

import jax
import jax.numpy as jnp
from jax.experimental import pallas as pl
from jax.experimental.pallas import tpu as pltpu


def _round_up(x, m):
    return ((x + m - 1) // m) * m


def synthesis_rollout_kernel(x_ref, h0_ref,              # (B, Dinp), (B, Hp)
                             w1_ref, b1_ref,             # (Dinp, F1p), (1, F1p)
                             wih_ref, bih_ref,           # (F1p, 3*Hp), (1, 3*Hp)  gates r,z,n
                             whh_ref, bhh_ref,           # (Hp, 3*Hp),  (1, 3*Hp)  gates r,z,n
                             w3_ref, b3_ref,             # (Hp, A), (1, A)   (already /temperature)
                             out_ref, hout_ref,          # (B, A), (B, Hp)
                             h_scr):                     # VMEM (B, Hp) carried hidden state
    """One grid step == one GRU timestep. Weights are VMEM-resident for the whole
    rollout (constant index maps); hidden state lives in VMEM scratch."""
    t = pl.program_id(0)
    Hp = h_scr.shape[1]

    @pl.when(t == 0)
    def _():
        h_scr[...] = h0_ref[...]

    h = h_scr[...]

    # --- fc1 (LinearDict): concatenated matmul + bias, then ReLU ---
    x = jnp.dot(x_ref[...], w1_ref[...], preferred_element_type=jnp.float32)
    x = jnp.maximum(x + b1_ref[...], 0.0)

    # --- GRUCell (PyTorch gate order r, z, n), gate matmuls fused 6 -> 2.
    # Gate g occupies lanes [g*Hp, (g+1)*Hp), so slices below are whole 128-lane tiles.
    gi = jnp.dot(x, wih_ref[...], preferred_element_type=jnp.float32) + bih_ref[...]
    gh = jnp.dot(h, whh_ref[...], preferred_element_type=jnp.float32) + bhh_ref[...]

    r = jax.nn.sigmoid(gi[:, 0:Hp] + gh[:, 0:Hp])
    z = jax.nn.sigmoid(gi[:, Hp:2 * Hp] + gh[:, Hp:2 * Hp])
    n = jnp.tanh(gi[:, 2 * Hp:3 * Hp] + r * gh[:, 2 * Hp:3 * Hp])
    h_new = (1.0 - z) * n + z * h
    h_scr[...] = h_new

    # --- fc3 (Linear) + softmax; 1/temperature already folded into w3/b3 ---
    logits = jnp.dot(h_new, w3_ref[...], preferred_element_type=jnp.float32) + b3_ref[...]
    m = jnp.max(logits, axis=-1, keepdims=True)
    e = jnp.exp(logits - m)
    inv_den = pl.reciprocal(jnp.sum(e, axis=-1, keepdims=True), approx=False)
    out_ref[...] = (e * inv_den).astype(out_ref.dtype)
    hout_ref[...] = h_new.astype(hout_ref.dtype)


def pack_params(params, temperature):
    """Pad + pack canonical (math-layout) params into the lane-aligned kernel layout."""
    w1, b1 = params["w1"], params["b1"]          # (Din, F1), (1, F1)
    wih, bih = params["wih"], params["bih"]      # (3, F1, H), (3, 1, H)
    whh, bhh = params["whh"], params["bhh"]      # (3, H, H),  (3, 1, H)
    w3, b3 = params["w3"], params["b3"]          # (H, A), (1, A)

    Din, F1 = w1.shape
    H = whh.shape[1]
    A = w3.shape[1]

    Dinp = _round_up(Din, 8)      # sublane-friendly K for fc1
    F1p = _round_up(F1, 8)        # sublane-friendly K for the input-to-hidden matmul
    Hp = _round_up(H, 128)        # one full 128-lane tile per gate

    f32 = jnp.float32
    w1p = jnp.zeros((Dinp, F1p), f32).at[:Din, :F1].set(w1)
    b1p = jnp.zeros((1, F1p), f32).at[:, :F1].set(b1)

    wihp = jnp.zeros((F1p, 3 * Hp), f32)
    bihp = jnp.zeros((1, 3 * Hp), f32)
    whhp = jnp.zeros((Hp, 3 * Hp), f32)
    bhhp = jnp.zeros((1, 3 * Hp), f32)
    for g in range(3):
        wihp = wihp.at[:F1, g * Hp:g * Hp + H].set(wih[g])
        bihp = bihp.at[:, g * Hp:g * Hp + H].set(bih[g])
        whhp = whhp.at[:H, g * Hp:g * Hp + H].set(whh[g])
        bhhp = bhhp.at[:, g * Hp:g * Hp + H].set(bhh[g])

    inv_t = 1.0 / float(temperature)   # fold softmax temperature into fc3
    w3p = jnp.zeros((Hp, A), f32).at[:H, :].set(w3 * inv_t)
    b3p = (b3 * inv_t).astype(f32)

    dims = dict(Din=Din, Dinp=Dinp, F1=F1, F1p=F1p, H=H, Hp=Hp, A=A)
    packed = dict(w1=w1p, b1=b1p, wih=wihp, bih=bihp, whh=whhp, bhh=bhhp,
                  w3=w3p, b3=b3p)
    return packed, dims


def synthesis_rollout(h0, state_seq, params, param_keys, temperature=1.0):
    """Runs T SynthesisNet steps in a single Pallas call.

    h0: (B, H). state_seq: dict key -> (T, B, *size). Returns (probs (T,B,A), h_T (B,H)).
    """
    packed, d = pack_params(params, temperature)
    B, H = h0.shape
    T = next(iter(state_seq.values())).shape[0]

    # Glue (once per rollout, not per step): flatten + concat LinearDict inputs,
    # zero-pad the feature dim to a sublane-friendly multiple of 8.
    x_cat = jnp.concatenate(
        [state_seq[k].reshape(T, B, -1) for k in param_keys], axis=-1
    ).astype(jnp.float32)
    x_cat = jnp.pad(x_cat, ((0, 0), (0, 0), (0, d["Dinp"] - d["Din"])))

    h0p = jnp.zeros((B, d["Hp"]), jnp.float32).at[:, :H].set(h0)

    Hp, A = d["Hp"], d["A"]

    def full(shape):
        return pl.BlockSpec(shape, lambda t, _n=len(shape): (0,) * _n)

    out, h_out = pl.pallas_call(
        synthesis_rollout_kernel,
        out_shape=(
            jax.ShapeDtypeStruct((T, B, A), jnp.float32),
            jax.ShapeDtypeStruct((B, Hp), jnp.float32),
        ),
        grid=(T,),
        in_specs=[
            pl.BlockSpec((None, B, d["Dinp"]), lambda t: (t, 0, 0)),   # x_t (T squeezed)
            full((B, Hp)),                                             # h0
            full(packed["w1"].shape), full(packed["b1"].shape),
            full(packed["wih"].shape), full(packed["bih"].shape),
            full(packed["whh"].shape), full(packed["bhh"].shape),
            full(packed["w3"].shape), full(packed["b3"].shape),
        ],
        out_specs=(
            pl.BlockSpec((None, B, A), lambda t: (t, 0, 0)),           # per-step probs
            pl.BlockSpec((B, Hp), lambda t: (0, 0)),                   # final hidden
        ),
        scratch_shapes=[pltpu.VMEM((B, Hp), jnp.float32)],
        compiler_params=pltpu.CompilerParams(
            # hidden state carries step->step, so the time axis must be sequential
            dimension_semantics=("arbitrary",),
        ),
    )(x_cat, h0p, packed["w1"], packed["b1"], packed["wih"], packed["bih"],
      packed["whh"], packed["bhh"], packed["w3"], packed["b3"])

    return out, h_out[:, :H]


def synthesis_forward(h, state_dict, params, param_keys, temperature=1.0):
    """Single-step forward, matching SynthesisNet.forward(h, state_dict)."""
    state_seq = {k: v[None] for k, v in state_dict.items()}
    out, h_new = synthesis_rollout(h, state_seq, params, param_keys, temperature)
    return out[0], h_new


def init_params(key, input_size_dict, hidden_size, action_size, fc1_dim=20):
    """Deterministic synthetic parameter init matching the module's shapes."""
    param_keys = list(input_size_dict.keys())
    sizes = [v if isinstance(v, int) else int(math.prod(v)) for v in input_size_dict.values()]
    d_in = sum(sizes)

    ks = jax.random.split(key, 8)
    std1 = 2.0 / (fc1_dim ** 0.5)
    # TODO(synk): nn.init.orthogonal on each sub-matrix approximated by gaussian init.
    w1 = jax.random.normal(ks[0], (d_in, fc1_dim), jnp.float32) * std1
    b1 = jnp.zeros((1, fc1_dim), jnp.float32)

    stdv = 1.0 / (hidden_size ** 0.5)
    wih = jax.random.uniform(ks[1], (3, fc1_dim, hidden_size), jnp.float32, -stdv, stdv)
    whh = jax.random.uniform(ks[2], (3, hidden_size, hidden_size), jnp.float32, -stdv, stdv)
    bih = jax.random.uniform(ks[3], (3, 1, hidden_size), jnp.float32, -stdv, stdv)
    bhh = jax.random.uniform(ks[4], (3, 1, hidden_size), jnp.float32, -stdv, stdv)

    w3 = jax.random.uniform(ks[5], (hidden_size, action_size), jnp.float32, -stdv, stdv)
    b3 = jax.random.uniform(ks[6], (1, action_size), jnp.float32, -stdv, stdv)

    return param_keys, dict(w1=w1, b1=b1, wih=wih, bih=bih, whh=whh, bhh=bhh,
                            w3=w3, b3=b3)


def reference_forward(h, state_dict, params, param_keys, temperature=1.0):
    """Pure-JAX single-step reference (full-precision dots) for correctness checks."""
    hp = jax.lax.Precision.HIGHEST
    B = h.shape[0]
    x = jnp.concatenate([state_dict[k].reshape(B, -1) for k in param_keys], axis=1)
    x = jnp.maximum(jnp.dot(x, params["w1"], precision=hp) + params["b1"], 0.0)
    gi = [jnp.dot(x, params["wih"][g], precision=hp) + params["bih"][g] for g in range(3)]
    gh = [jnp.dot(h, params["whh"][g], precision=hp) + params["bhh"][g] for g in range(3)]
    r = jax.nn.sigmoid(gi[0] + gh[0])
    z = jax.nn.sigmoid(gi[1] + gh[1])
    n = jnp.tanh(gi[2] + r * gh[2])
    h_new = (1.0 - z) * n + z * h
    logits = (jnp.dot(h_new, params["w3"], precision=hp) + params["b3"]) / temperature
    return jax.nn.softmax(logits, axis=-1), h_new


def reference_rollout(h0, state_seq, params, param_keys, temperature=1.0):
    T = next(iter(state_seq.values())).shape[0]
    outs, h = [], h0
    for t in range(T):
        sd = {k: v[t] for k, v in state_seq.items()}
        o, h = reference_forward(h, sd, params, param_keys, temperature)
        outs.append(o)
    return jnp.stack(outs, axis=0), h


if __name__ == "__main__":
    # Shapes consistent with the module: two state_dict entries, hidden_size=32,
    # 5 action types; batch raised to 8 (fills f32 sublanes), rollout length 8.
    B = 8
    T = 8
    hidden_size = 32
    action_types = ["a", "b", "c", "d", "e"]
    action_size = len(action_types)
    input_size_dict = {"obs": (4, 4), "aux": 6}
    # TODO(synk): self.temperature is never set in the PyTorch __init__; passed explicitly.
    temperature = 0.7

    key = jax.random.PRNGKey(0)
    k_param, k_h, k_obs, k_aux = jax.random.split(key, 4)
    param_keys, params = init_params(k_param, input_size_dict, hidden_size, action_size)

    h0 = jax.random.normal(k_h, (B, hidden_size), jnp.float32)
    state_seq = {
        "obs": jax.random.normal(k_obs, (T, B, 4, 4), jnp.float32),
        "aux": jax.random.normal(k_aux, (T, B, 6), jnp.float32),
    }

    # Full T-step rollout in one kernel launch (weights VMEM-resident across steps).
    out_seq, h_T = synthesis_rollout(h0, state_seq, params, param_keys, temperature)
    out_seq = jax.block_until_ready(out_seq)
    h_T = jax.block_until_ready(h_T)

    ref_seq, ref_hT = reference_rollout(h0, state_seq, params, param_keys, temperature)
    assert out_seq.shape == (T, B, action_size) and h_T.shape == (B, hidden_size)
    assert jnp.allclose(out_seq, ref_seq, atol=1e-4, rtol=1e-4)
    assert jnp.allclose(h_T, ref_hT, atol=1e-4, rtol=1e-4)
    assert jnp.allclose(jnp.sum(out_seq, axis=-1), 1.0, atol=1e-5)

    # Single-step path matching the module's forward(h, state_dict).
    sd0 = {k: v[0] for k, v in state_seq.items()}
    out1, h1 = synthesis_forward(h0, sd0, params, param_keys, temperature)
    out1 = jax.block_until_ready(out1)
    h1 = jax.block_until_ready(h1)
    ref1, ref_h1 = reference_forward(h0, sd0, params, param_keys, temperature)
    assert out1.shape == (B, action_size) and h1.shape == (B, hidden_size)
    assert jnp.allclose(out1, ref1, atol=1e-5, rtol=1e-5)
    assert jnp.allclose(h1, ref_h1, atol=1e-5, rtol=1e-5)

    print("KERNEL_OK")
</pallas_src>

<mosaic_0001>
module attributes {stable_mosaic.version = 11 : i64} {
  func.func @synthesis_rollout_kernel(%arg0: i32, %arg1: memref<1x8x24xf32, #tpu.memory_space<vmem>>, %arg2: memref<8x128xf32, #tpu.memory_space<vmem>>, %arg3: memref<24x24xf32, #tpu.memory_space<vmem>>, %arg4: memref<1x24xf32, #tpu.memory_space<vmem>>, %arg5: memref<24x384xf32, #tpu.memory_space<vmem>>, %arg6: memref<1x384xf32, #tpu.memory_space<vmem>>, %arg7: memref<128x384xf32, #tpu.memory_space<vmem>>, %arg8: memref<1x384xf32, #tpu.memory_space<vmem>>, %arg9: memref<128x5xf32, #tpu.memory_space<vmem>>, %arg10: memref<1x5xf32, #tpu.memory_space<vmem>>, %arg11: memref<1x8x5xf32, #tpu.memory_space<vmem>>, %arg12: memref<8x128xf32, #tpu.memory_space<vmem>>, %arg13: memref<8x128xf32, #tpu.memory_space<vmem>>) attributes {dimension_semantics = [#tpu.dimension_semantics<arbitrary>], iteration_bounds = array<i64: 8>, scalar_prefetch = 0 : i64, scratch_operands = 1 : i64, tpu.core_type = #tpu.core_type<tc>, window_params = [{transform_indices = @transform_0, window_bounds = array<i64: 1, 8, 24>}, {pipeline_mode = #tpu.pipeline_mode<synchronous>, transform_indices = @transform_1, window_bounds = array<i64: 8, 128>}, {pipeline_mode = #tpu.pipeline_mode<synchronous>, transform_indices = @transform_2, window_bounds = array<i64: 24, 24>}, {pipeline_mode = #tpu.pipeline_mode<synchronous>, transform_indices = @transform_3, window_bounds = array<i64: 1, 24>}, {pipeline_mode = #tpu.pipeline_mode<synchronous>, transform_indices = @transform_4, window_bounds = array<i64: 24, 384>}, {pipeline_mode = #tpu.pipeline_mode<synchronous>, transform_indices = @transform_5, window_bounds = array<i64: 1, 384>}, {pipeline_mode = #tpu.pipeline_mode<synchronous>, transform_indices = @transform_6, window_bounds = array<i64: 128, 384>}, {pipeline_mode = #tpu.pipeline_mode<synchronous>, transform_indices = @transform_7, window_bounds = array<i64: 1, 384>}, {pipeline_mode = #tpu.pipeline_mode<synchronous>, transform_indices = @transform_8, window_bounds = array<i64: 128, 5>}, {pipeline_mode = #tpu.pipeline_mode<synchronous>, transform_indices = @transform_9, window_bounds = array<i64: 1, 5>}, {transform_indices = @transform_10, window_bounds = array<i64: 1, 8, 5>}, {pipeline_mode = #tpu.pipeline_mode<synchronous>, transform_indices = @transform_11, window_bounds = array<i64: 8, 128>}]} {
    %c0_i32 = arith.constant 0 : i32
    %0 = arith.cmpi eq, %arg0, %c0_i32 : i32
    %1 = arith.extui %0 : i1 to i32
    %c0_i32_0 = arith.constant 0 : i32
    %2 = arith.cmpi ne, %1, %c0_i32_0 : i32
    scf.if %2 {
      %c0_37 = arith.constant 0 : index
      %c0_38 = arith.constant 0 : index
      %69 = vector.load %arg2[%c0_37, %c0_38] : memref<8x128xf32, #tpu.memory_space<vmem>>, vector<8x128xf32>
      %c0_39 = arith.constant 0 : index
      %c0_40 = arith.constant 0 : index
      %70 = vector.load %arg13[%c0_39, %c0_40] : memref<8x128xf32, #tpu.memory_space<vmem>>, vector<8x128xf32>
      tpu.vector_store %arg13[%c0_39, %c0_40], %69 {strides = array<i32>} : memref<8x128xf32, #tpu.memory_space<vmem>>, vector<8x128xf32>,
    } else {
    }
    %c0 = arith.constant 0 : index
    %c0_1 = arith.constant 0 : index
    %3 = vector.load %arg13[%c0, %c0_1] : memref<8x128xf32, #tpu.memory_space<vmem>>, vector<8x128xf32>
    %c0_2 = arith.constant 0 : index
    %c0_3 = arith.constant 0 : index
    %c0_4 = arith.constant 0 : index
    %4 = vector.load %arg1[%c0_2, %c0_3, %c0_4] : memref<1x8x24xf32, #tpu.memory_space<vmem>>, vector<1x8x24xf32>
    %5 = vector.shape_cast %4 : vector<1x8x24xf32> to vector<8x24xf32>
    %c0_5 = arith.constant 0 : index
    %c0_6 = arith.constant 0 : index
    %6 = vector.load %arg3[%c0_5, %c0_6] : memref<24x24xf32, #tpu.memory_space<vmem>>, vector<24x24xf32>
    %cst = arith.constant dense<0.000000e+00> : vector<8x24xf32>
    %7 = tpu.matmul %5, %6, %cst {dimension_numbers = #tpu.dot_dimension_numbers<[1], [0], [0], [1], [0, 0, 1, 1], [], []>} : vector<8x24xf32>, vector<24x24xf32>, vector<8x24xf32> -> vector<8x24xf32>
    %c0_7 = arith.constant 0 : index
    %c0_8 = arith.constant 0 : index
    %8 = vector.load %arg4[%c0_7, %c0_8] : memref<1x24xf32, #tpu.memory_space<vmem>>, vector<1x24xf32>
    %9 = vector.broadcast %8 : vector<1x24xf32> to vector<8x24xf32>
    %10 = arith.addf %7, %9 : vector<8x24xf32>
    %cst_9 = arith.constant 0.000000e+00 : f32
    %11 = vector.broadcast %cst_9 : f32 to vector<8x24xf32>
    %12 = arith.maximumf %10, %11 : vector<8x24xf32>
    %c0_10 = arith.constant 0 : index
    %c0_11 = arith.constant 0 : index
    %13 = vector.load %arg5[%c0_10, %c0_11] : memref<24x384xf32, #tpu.memory_space<vmem>>, vector<24x384xf32>
    %cst_12 = arith.constant dense<0.000000e+00> : vector<8x384xf32>
    %14 = tpu.matmul %12, %13, %cst_12 {dimension_numbers = #tpu.dot_dimension_numbers<[1], [0], [0], [1], [0, 0, 1, 1], [], []>} : vector<8x24xf32>, vector<24x384xf32>, vector<8x384xf32> -> vector<8x384xf32>
    %c0_13 = arith.constant 0 : index
    %c0_14 = arith.constant 0 : index
    %15 = vector.load %arg6[%c0_13, %c0_14] : memref<1x384xf32, #tpu.memory_space<vmem>>, vector<1x384xf32>
    %16 = vector.broadcast %15 : vector<1x384xf32> to vector<8x384xf32>
    %17 = arith.addf %14, %16 : vector<8x384xf32>
    %c0_15 = arith.constant 0 : index
    %c0_16 = arith.constant 0 : index
    %18 = vector.load %arg7[%c0_15, %c0_16] : memref<128x384xf32, #tpu.memory_space<vmem>>, vector<128x384xf32>
    %cst_17 = arith.constant dense<0.000000e+00> : vector<8x384xf32>
    %19 = tpu.matmul %3, %18, %cst_17 {dimension_numbers = #tpu.dot_dimension_numbers<[1], [0], [0], [1], [0, 0, 1, 1], [], []>} : vector<8x128xf32>, vector<128x384xf32>, vector<8x384xf32> -> vector<8x384xf32>
    %c0_18 = arith.constant 0 : index
    %c0_19 = arith.constant 0 : index
    %20 = vector.load %arg8[%c0_18, %c0_19] : memref<1x384xf32, #tpu.memory_space<vmem>>, vector<1x384xf32>
    %21 = vector.broadcast %20 : vector<1x384xf32> to vector<8x384xf32>
    %22 = arith.addf %19, %21 : vector<8x384xf32>
    %23 = vector.extract_strided_slice %17 {offsets = [0, 0], sizes = [8, 128], strides = [1, 1]} : vector<8x384xf32> to vector<8x128xf32>
    %24 = vector.extract_strided_slice %22 {offsets = [0, 0], sizes = [8, 128], strides = [1, 1]} : vector<8x384xf32> to vector<8x128xf32>
    %25 = arith.addf %23, %24 : vector<8x128xf32>
    %26 = arith.negf %25 : vector<8x128xf32>
    %27 = math.exp %26 : vector<8x128xf32>
    %cst_20 = arith.constant 1.000000e+00 : f32
    %28 = vector.broadcast %cst_20 : f32 to vector<8x128xf32>
    %29 = arith.addf %28, %27 : vector<8x128xf32>
    %30 = arith.divf %28, %29 : vector<8x128xf32>
    %31 = vector.extract_strided_slice %17 {offsets = [0, 128], sizes = [8, 128], strides = [1, 1]} : vector<8x384xf32> to vector<8x128xf32>
    %32 = vector.extract_strided_slice %22 {offsets = [0, 128], sizes = [8, 128], strides = [1, 1]} : vector<8x384xf32> to vector<8x128xf32>
    %33 = arith.addf %31, %32 : vector<8x128xf32>
    %34 = arith.negf %33 : vector<8x128xf32>
    %35 = math.exp %34 : vector<8x128xf32>
    %cst_21 = arith.constant 1.000000e+00 : f32
    %36 = vector.broadcast %cst_21 : f32 to vector<8x128xf32>
    %37 = arith.addf %36, %35 : vector<8x128xf32>
    %38 = arith.divf %36, %37 : vector<8x128xf32>
    %39 = vector.extract_strided_slice %17 {offsets = [0, 256], sizes = [8, 128], strides = [1, 1]} : vector<8x384xf32> to vector<8x128xf32>
    %40 = vector.extract_strided_slice %22 {offsets = [0, 256], sizes = [8, 128], strides = [1, 1]} : vector<8x384xf32> to vector<8x128xf32>
    %41 = arith.mulf %30, %40 : vector<8x128xf32>
    %42 = arith.addf %39, %41 : vector<8x128xf32>
    %43 = math.tanh %42 : vector<8x128xf32>
    %cst_22 = arith.constant 1.000000e+00 : f32
    %44 = vector.broadcast %cst_22 : f32 to vector<8x128xf32>
    %45 = arith.subf %44, %38 : vector<8x128xf32>
    %46 = arith.mulf %45, %43 : vector<8x128xf32>
    %47 = arith.mulf %38, %3 : vector<8x128xf32>
    %48 = arith.addf %46, %47 : vector<8x128xf32>
    %c0_23 = arith.constant 0 : index
    %c0_24 = arith.constant 0 : index
    %49 = vector.load %arg13[%c0_23, %c0_24] : memref<8x128xf32, #tpu.memory_space<vmem>>, vector<8x128xf32>
    tpu.vector_store %arg13[%c0_23, %c0_24], %48 {strides = array<i32>} : memref<8x128xf32, #tpu.memory_space<vmem>>, vector<8x128xf32>,
    %c0_25 = arith.constant 0 : index
    %c0_26 = arith.constant 0 : index
    %50 = vector.load %arg9[%c0_25, %c0_26] : memref<128x5xf32, #tpu.memory_space<vmem>>, vector<128x5xf32>
    %cst_27 = arith.constant dense<0.000000e+00> : vector<8x5xf32>
    %51 = tpu.matmul %48, %50, %cst_27 {dimension_numbers = #tpu.dot_dimension_numbers<[1], [0], [0], [1], [0, 0, 1, 1], [], []>} : vector<8x128xf32>, vector<128x5xf32>, vector<8x5xf32> -> vector<8x5xf32>
    %c0_28 = arith.constant 0 : index
    %c0_29 = arith.constant 0 : index
    %52 = vector.load %arg10[%c0_28, %c0_29] : memref<1x5xf32, #tpu.memory_space<vmem>>, vector<1x5xf32>
    %53 = vector.broadcast %52 : vector<1x5xf32> to vector<8x5xf32>
    %54 = arith.addf %51, %53 : vector<8x5xf32>
    %cst_30 = arith.constant dense<0xFF800000> : vector<8xf32>
    %55 = vector.multi_reduction <maximumf>, %54, %cst_30 [1] : vector<8x5xf32> to vector<8xf32>
    %56 = vector.shape_cast %55 : vector<8xf32> to vector<8x1xf32>
    %57 = vector.broadcast %56 : vector<8x1xf32> to vector<8x5xf32>
    %58 = arith.subf %54, %57 : vector<8x5xf32>
    %59 = math.exp %58 : vector<8x5xf32>
    %cst_31 = arith.constant dense<0.000000e+00> : vector<8xf32>
    %60 = vector.multi_reduction <add>, %59, %cst_31 [1] : vector<8x5xf32> to vector<8xf32>
    %61 = vector.shape_cast %60 : vector<8xf32> to vector<8x1xf32>
    %62 = tpu.reciprocal %61 : vector<8x1xf32> -> vector<8x1xf32>
    %63 = vector.broadcast %62 : vector<8x1xf32> to vector<8x5xf32>
    %64 = arith.mulf %59, %63 : vector<8x5xf32>
    %c0_32 = arith.constant 0 : index
    %c0_33 = arith.constant 0 : index
    %c0_34 = arith.constant 0 : index
    %65 = vector.load %arg11[%c0_32, %c0_33, %c0_34] : memref<1x8x5xf32, #tpu.memory_space<vmem>>, vector<1x8x5xf32>
    %66 = vector.shape_cast %65 : vector<1x8x5xf32> to vector<8x5xf32>
    %67 = vector.shape_cast %64 : vector<8x5xf32> to vector<1x8x5xf32>
    tpu.vector_store %arg11[%c0_32, %c0_33, %c0_34], %67 {strides = array<i32>} : memref<1x8x5xf32, #tpu.memory_space<vmem>>, vector<1x8x5xf32>,
    %c0_35 = arith.constant 0 : index
    %c0_36 = arith.constant 0 : index
    %68 = vector.load %arg12[%c0_35, %c0_36] : memref<8x128xf32, #tpu.memory_space<vmem>>, vector<8x128xf32>
    tpu.vector_store %arg12[%c0_35, %c0_36], %48 {strides = array<i32>} : memref<8x128xf32, #tpu.memory_space<vmem>>, vector<8x128xf32>,
    return
  }
  func.func @transform_0(%arg0: i32) -> (i32, i32, i32) {
    %c0_i32 = arith.constant 0 : i32
    %c0_i32_0 = arith.constant 0 : i32
    %c0_i32_1 = arith.constant 0 : i32
    return %arg0, %c0_i32, %c0_i32_0 : i32, i32, i32
  }
  func.func @transform_1(%arg0: i32) -> (i32, i32) {
    %c0_i32 = arith.constant 0 : i32
    %c0_i32_0 = arith.constant 0 : i32
    %c0_i32_1 = arith.constant 0 : i32
    return %c0_i32, %c0_i32_0 : i32, i32
  }
  func.func @transform_2(%arg0: i32) -> (i32, i32) {
    %c0_i32 = arith.constant 0 : i32
    %c0_i32_0 = arith.constant 0 : i32
    %c0_i32_1 = arith.constant 0 : i32
    return %c0_i32, %c0_i32_0 : i32, i32
  }
  func.func @transform_3(%arg0: i32) -> (i32, i32) {
    %c0_i32 = arith.constant 0 : i32
    %c0_i32_0 = arith.constant 0 : i32
    %c0_i32_1 = arith.constant 0 : i32
    return %c0_i32, %c0_i32_0 : i32, i32
  }
  func.func @transform_4(%arg0: i32) -> (i32, i32) {
    %c0_i32 = arith.constant 0 : i32
    %c0_i32_0 = arith.constant 0 : i32
    %c0_i32_1 = arith.constant 0 : i32
    return %c0_i32, %c0_i32_0 : i32, i32
  }
  func.func @transform_5(%arg0: i32) -> (i32, i32) {
    %c0_i32 = arith.constant 0 : i32
    %c0_i32_0 = arith.constant 0 : i32
    %c0_i32_1 = arith.constant 0 : i32
    return %c0_i32, %c0_i32_0 : i32, i32
  }
  func.func @transform_6(%arg0: i32) -> (i32, i32) {
    %c0_i32 = arith.constant 0 : i32
    %c0_i32_0 = arith.constant 0 : i32
    %c0_i32_1 = arith.constant 0 : i32
    return %c0_i32, %c0_i32_0 : i32, i32
  }
  func.func @transform_7(%arg0: i32) -> (i32, i32) {
    %c0_i32 = arith.constant 0 : i32
    %c0_i32_0 = arith.constant 0 : i32
    %c0_i32_1 = arith.constant 0 : i32
    return %c0_i32, %c0_i32_0 : i32, i32
  }
  func.func @transform_8(%arg0: i32) -> (i32, i32) {
    %c0_i32 = arith.constant 0 : i32
    %c0_i32_0 = arith.constant 0 : i32
    %c0_i32_1 = arith.constant 0 : i32
    return %c0_i32, %c0_i32_0 : i32, i32
  }
  func.func @transform_9(%arg0: i32) -> (i32, i32) {
    %c0_i32 = arith.constant 0 : i32
    %c0_i32_0 = arith.constant 0 : i32
    %c0_i32_1 = arith.constant 0 : i32
    return %c0_i32, %c0_i32_0 : i32, i32
  }
  func.func @transform_10(%arg0: i32) -> (i32, i32, i32) {
    %c0_i32 = arith.constant 0 : i32
    %c0_i32_0 = arith.constant 0 : i32
    %c0_i32_1 = arith.constant 0 : i32
    return %arg0, %c0_i32, %c0_i32_0 : i32, i32, i32
  }
  func.func @transform_11(%arg0: i32) -> (i32, i32) {
    %c0_i32 = arith.constant 0 : i32
    %c0_i32_0 = arith.constant 0 : i32
    %c0_i32_1 = arith.constant 0 : i32
    return %c0_i32, %c0_i32_0 : i32, i32
  }
}

</mosaic_0001>

<bundles_post_ra>
// kernel: tpu_custom_call.1
= control target key start
LH: loop header
LB: loop body
LE: loop exit
PB: predicated region body
PF: predicated region fallthrough
CT: control target
= control target key end

     0   :  { %17 = vsyncpa [#allocation4], 0  ;;  %s1933_s0 = inlined_call_operand.vmem [shape: f32[8,8,24], index: 0, kind: input, shape index: {}]   ;;  %s1934_s1 = inlined_call_operand.hbm [shape: f32[8,128], index: 1, kind: input, shape index: {}]   ;;  %s1935_s2 = inlined_call_operand.hbm [shape: f32[24,24], index: 2, kind: input, shape index: {}]   ;;  %s1936_s3 = inlined_call_operand.vmem [shape: f32[1,24], index: 3, kind: input, shape index: {}]   ;;  %s1937_s4 = inlined_call_operand.vmem [shape: f32[24,384], index: 4, kind: input, shape index: {}]   ;;  %s1938_s5 = inlined_call_operand.vmem [shape: f32[1,384], index: 5, kind: input, shape index: {}]   ;;  %s1939_s6 = inlined_call_operand.hbm [shape: f32[128,384], index: 6, kind: input, shape index: {}]   ;;  %s1940_s7 = inlined_call_operand.vmem [shape: f32[1,384], index: 7, kind: input, shape index: {}]   ;;  %s1941_s8 = inlined_call_operand.vmem [shape: f32[128,5], index: 8, kind: input, shape index: {}]   ;;  %s1942_s9 = inlined_call_operand.vmem [shape: f32[1,5], index: 9, kind: input, shape index: {}]   ;;  %s1943_s10 = inlined_call_operand.vmem [shape: f32[8,8,5], index: 10, kind: output, shape index: {0}]   ;;  %s1944_s11 = inlined_call_operand.hbm [shape: f32[8,128], index: 11, kind: output, shape index: {1}]  }
   0x1   :  { %18 = vsyncpa [#allocation7], 0 }
   0x2   :  { %19 = vsyncpa [#allocation5], 0  ;;  %s1648_s17 = smov 0  }
   0x3 LB: > { %s1577_s18 = smov [#allocation6]   ;;  %s1654_s20 = sadd.s32 4294967295, %s1575_s17   ;;  %s1575_s17 = sphi %s1648_s17, %s25_s17  }
   0x4   : > { %s315_s19 = sshll.u32 %s1577_s18, 4  ;;  %p1131_p0 = scmp.ge.s32.totalorder %s1575_s17, 1  ;;  %s1660_s19 = int_to_ptr.vmem [resolvable:$true] %s315_s19 }
   0x5   : > { %p292_p1 = scmp.lt.s32.totalorder %s1575_s17, 9  ;;  %p1406_p3 = scmp.eq.s32.totalorder %s1654_s20, 0 }
   0x6   : > { %s1578_s22 = smov [#allocation3]   ;;  %s1579_s25 = smov [#allocation8]  }
   0x7   : > { %p1662_p4 = pnand %p1131_p0, %p292_p1  ;;  %s305_s23 = sshll.u32 %s1578_s22, 4  ;;  %s1668_s23 = int_to_ptr.vmem [resolvable:$true] %s305_s23 }
   0x8   : > { %s337_s26 = sshll.u32 %s1579_s25, 4  ;;  %s1447_s29 = scalar_lea.hbm %s1935_s2, 384  ;;  %s1676_s26 = int_to_ptr.vmem [resolvable:$true] %s337_s26 }
   0x9   : > { %p1396_p5 = pneg %p1662_p4  ;;  %p1448_p7 = scmp.ne.s32.totalorder %s1935_s2, %s1447_s29 }
   0xa   : > { %p1454_p11 = scmp.lt.u32.totalorder %s1447_s29, %s1935_s2 }
   0xb   : > { %p1672_p6 = pnand %p1406_p3, %p1396_p5 }
   0xd   : > { %p1686_p8 = pneg %p1672_p6 }
   0xf   : > { %p1450_p9 = pnand %p1686_p8, %p1448_p7 }
  0x11   : > { %p1451_p10 = pneg %p1450_p9 }
  0x13   : > { %p1456_p12 = pnand %p1454_p11, %p1451_p10 }
  0x15   : > { %1459 = shalt.err (!%p1456_p12)
}
  0x16   : > { %s1460_s16 = scalar_lea.vmem %s1660_s19, 384  ;;  %p1468_p5 = scmp.lt.s32.totalorder %s1660_s19, %s1660_s19 }
  0x17   : > { %p1461_p13 = scmp.ne.s32.totalorder %s1660_s19, %s1460_s16  ;;  %p1469_p2 = scmp.lt.s32.totalorder %s1460_s16, %s1460_s16 }
  0x19   : > { %p1463_p0 = pnand %p1461_p13, %p1686_p8  ;;  %p1470_p7 = por %p1469_p2, %p1468_p5 }
  0x1b   : > { %p1464_p1 = pneg %p1463_p0 }
  0x1d   : > { %p1471_p9 = pnand %p1470_p7, %p1464_p1 }
  0x1f   : > { %1474 = shalt.err (!%p1471_p9)
}
  0x20   : > { %s1580_s18 = smov 128   ;;  %s1581_s22 = smov 8  }
  0x21   : > { %1402 = dma.hbm_to_vmem [thread:$0]  (!%p1672_p6), %s1935_s2, 384, %s1660_s19, [#allocation7], %s1580_s18, %s1580_s18, %s1581_s22  }
  0x22   : > { %s1475_s30 = scalar_lea.hbm %s1934_s1, 128 }
  0x23   : > { %p1476_p2 = scmp.ne.s32.totalorder %s1934_s1, %s1475_s30  ;;  %p1482_p12 = scmp.lt.u32.totalorder %s1475_s30, %s1934_s1 }
  0x25   : > { %p1478_p10 = pnand %p1476_p2, %p1686_p8 }
  0x27   : > { %p1479_p11 = pneg %p1478_p10 }
  0x29   : > { %p1484_p13 = pnand %p1482_p12, %p1479_p11 }
  0x2b   : > { %1487 = shalt.err (!%p1484_p13)
}
  0x2c   : > { %s1488_s19 = scalar_lea.vmem %s1668_s23, 128  ;;  %p1496_p7 = scmp.lt.s32.totalorder %s1668_s23, %s1668_s23 }
  0x2d   : > { %p1489_p0 = scmp.ne.s32.totalorder %s1668_s23, %s1488_s19  ;;  %p1497_p9 = scmp.lt.s32.totalorder %s1488_s19, %s1488_s19 }
  0x2f   : > { %p1491_p1 = pnand %p1489_p0, %p1686_p8  ;;  %p1498_p2 = por %p1497_p9, %p1496_p7 }
  0x31   : > { %p1492_p5 = pneg %p1491_p1 }
  0x33   : > { %p1499_p10 = pnand %p1498_p2, %p1492_p5 }
  0x35   : > { %1502 = shalt.err (!%p1499_p10)
}
  0x36   : > { %1399 = dma.hbm_to_vmem [thread:$0]  (!%p1672_p6), %s1934_s1, 128, %s1668_s23, [#allocation4]  }
  0x37   : > { %s1503_s28 = scalar_lea.hbm %s1939_s6, 6144 }
  0x38   : > { %p1504_p11 = scmp.ne.s32.totalorder %s1939_s6, %s1503_s28  ;;  %p1510_p0 = scmp.lt.u32.totalorder %s1503_s28, %s1939_s6 }
  0x3a   : > { %p1506_p12 = pnand %p1504_p11, %p1686_p8 }
  0x3c   : > { %p1507_p13 = pneg %p1506_p12 }
  0x3e   : > { %p1512_p1 = pnand %p1510_p0, %p1507_p13 }
  0x40   : > { %1515 = shalt.err (!%p1512_p1)
}
  0x41   : > { %s1516_s23 = scalar_lea.vmem %s1676_s26, 6144  ;;  %p1524_p2 = scmp.lt.s32.totalorder %s1676_s26, %s1676_s26 }
  0x42   : > { %p1517_p5 = scmp.ne.s32.totalorder %s1676_s26, %s1516_s23  ;;  %p1525_p10 = scmp.lt.s32.totalorder %s1516_s23, %s1516_s23 }
  0x44   : > { %p1519_p7 = pnand %p1517_p5, %p1686_p8  ;;  %p1526_p11 = por %p1525_p10, %p1524_p2 }
  0x46   : > { %p1520_p9 = pneg %p1519_p7 }
  0x48   : > { %p1527_p12 = pnand %p1526_p11, %p1520_p9 }
  0x4a   : > { %1530 = shalt.err (!%p1527_p12)
}
  0x4b   : > { %s1582_s15 = smov 384   ;;  %s1583_s16 = smov 24  }
  0x4c   : > { %1405 = dma.hbm_to_vmem [thread:$0]  (!%p1672_p6), %s1939_s6, 6144, %s1676_s26, [#allocation7], %s1582_s15, %s1582_s15, %s1583_s16  }
  0x4d   : > { %369 = sbr.rel (%p1662_p4) target bundleno = 1123 (0x463), region = 60 }
  0x54   : > { %1562 = dma.done.wait (%p1406_p3), [#allocation4], 128  }
  0x55   : > { %1564 = vsyncadd (%p1406_p3), [#allocation4], 4294967168 }
  0x56   : > { %1566 = dma.done.wait (%p1406_p3), [#allocation7], 6528  }
  0x57   : > { %1568 = vsyncadd (%p1406_p3), [#allocation7], 4294960768  ;;  %p415_p8 = scmp.lt.s32.totalorder %s1654_s20, 7  ;;  %p1948_p4 = scmp.ne.s32.totalorder %s1654_s20, 0 }
  0x58   : > { %v427_v0 = vld [vmem:[#allocation3] sm:$0xff] (!%p1948_p4) }
  0x59   : > { %s416_s24 = scalar_select %p415_p8, %s1654_s20, 7 }
  0x5a   : > { %426 = sbr.rel (%p1948_p4) target bundleno = 97 (0x61), region = 76  ;;  %428 = vst [vmem:[#allocation2] sm:$0xff] (!%p1948_p4), %v427_v0 }
  0x5b   : > { %s1140_s26 = sshll.u32 %s416_s24, 3 }
  0x5c   : > { %s1768_s22 = scalar_lea.vmem %s1933_s0, %s1140_s26  ;;  %s1773_s28 = scalar_lea.vmem %s1943_s10, %s1140_s26 }
  0x61 PF: > { %v431_v1 = vld [vmem:[#allocation6] sm:$0xff]  ;;  %v432_v2 = vld [vmem:[#allocation6 + $0x8] sm:$0xff]  ;;  %v1584_v3 = vmov 0.0|0.0   ;;  %vm1585_vm0 = vmmov 0   ;;  %v1586_v5 = vmov 0.0   ;;  %v690_v7 = vld [vmem:[#allocation8 + $0x20] sm:$0xff] }
  0x62   : > { %1284 = vmatprep.subr.bf16.mxu0 %v1584_v3  ;;  %v1285_v4 = vpack.c.bf16 %v432_v2, %v431_v1  ;;  %1202 = vmatprep.mubr.msk.f32.mxu0 %vm1585_vm0, %v1586_v5  ;;  %v687_v6 = vld [vmem:[#allocation8 + $0x8] sm:$0xff]  ;;  %v686_v9 = vld [vmem:[#allocation8] sm:$0xff]  ;;  %v689_v10 = vld [vmem:[#allocation8 + $0x18] sm:$0xff]  ;;  %vm441_vm1 = vcmask 195584   ;;  %vm1007_vm2 = vcmask 39936   ;;  %p1412_p3 = scmp.eq.s32.totalorder %s1654_s20, 7 }
  0x63   : > { %v1294_v8 = vpack.c.bf16 %v690_v7, %v687_v6  ;;  %v693_v11 = vld [vmem:[#allocation8 + $0x38] sm:$0xff]  ;;  %815 = vmatprep.mubr.f32.mxu1 %v1586_v5  ;;  %v1296_v12 = vpack.c.bf16 %v689_v10, %v686_v9  ;;  %v696_v13 = vld [vmem:[#allocation8 + $0x50] sm:$0xff]  ;;  %v695_v15 = vld [vmem:[#allocation8 + $0x48] sm:$0xff]  ;;  %s1587_s26 = smov [#allocation9]  }
  0x64   : > { %1286 = vmatpush3.bf16.msra.mxu0 %v1285_v4  ;;  %v692_v14 = vld [vmem:[#allocation8 + $0x30] sm:$0xff]  ;;  %v433_v16 = vld [vmem:[#allocation6 + $0x10] sm:$0xff]  ;;  %v1298_v17 = vpack.c.bf16 %v696_v13, %v693_v11  ;;  %v699_v18 = vld [vmem:[#allocation8 + $0x68] sm:$0xff]  ;;  %s1035_s13 = sshll.u32 %s1587_s26, 4  ;;  %s1036_s13 = int_to_ptr.vmem [resolvable:$true] %s1035_s13 }
  0x65   : > { %1200 = vmatprep.subr.mxu0 %v1586_v5  ;;  %1295 = vmatprep.subr.bf16.mxu1 %v1294_v8  ;;  %v702_v19 = vld [vmem:[#allocation8 + $0x80] sm:$0xff]  ;;  %v430_v20 = vld [vmem:[%s1768_s22] sm:$0xff]  ;;  %v1300_v21 = vpack.c.bf16 %v695_v15, %v692_v14  ;;  %v708_v26 = vld [vmem:[#allocation8 + $0xb0] sm:$0xff]  ;;  %s1531_s21 = scalar_lea.vmem %s1036_s13, 128  ;;  %p1538_p1 = scmp.lt.s32.totalorder %s1036_s13, %s1036_s13 }
  0x66   : > { %1297 = vmatpush1.bf16.msra.mxu1 %v1296_v12  ;;  %v1302_v22 = vpack.c.bf16 %v702_v19, %v699_v18  ;;  %v698_v23 = vld [vmem:[#allocation8 + $0x60] sm:$0xff]  ;;  %v701_v24 = vld [vmem:[#allocation8 + $0x78] sm:$0xff]  ;;  %v704_v29 = vld [vmem:[#allocation8 + $0x90] sm:$0xff]  ;;  %p1532_p6 = scmp.ne.s32.totalorder %s1036_s13, %s1531_s21  ;;  %p1539_p5 = scmp.lt.s32.totalorder %s1531_s21, %s1531_s21 }
  0x67   : > { %1299 = vmatprep.subr.bf16.mxu1 %v1298_v17  ;;  %v705_v25 = vld [vmem:[#allocation8 + $0x98] sm:$0xff]  ;;  %v517_v27 = vld [vmem:[%s1937_s4 + $0x8] sm:$0xff]  ;;  %v1304_v28 = vpack.c.bf16 %v701_v24, %v698_v23  ;;  %v707_v32 = vld [vmem:[#allocation8 + $0xa8] sm:$0xff] }
  0x68   : > { %1201 = vmatpush3.msra.mxu0 %v433_v16  ;;  %v520_v30 = vld [vmem:[%s1937_s4 + $0x20] sm:$0xff]  ;;  %v1306_v31 = vpack.c.bf16 %v708_v26, %v705_v25  ;;  %v519_v35 = vld [vmem:[%s1937_s4 + $0x18] sm:$0xff]  ;;  %v711_v36 = vld [vmem:[#allocation8 + $0xc8] sm:$0xff]  ;;  %v1308_v39 = vpack.c.bf16 %v707_v32, %v704_v29  ;;  %p1533_p13 = pnand %p1532_p6, %p1412_p3  ;;  %p1540_p7 = por %p1539_p5, %p1538_p1 }
  0x69   : > { %1203 = vmatmul.mubr.msk.f32.vlgmr.msra.gmra.mrb[0].mxu0 %vm441_vm1, %v430_v20  ;;  %v1287_v33 = vpack.c.bf16 %v520_v30, %v517_v27  ;;  %v516_v34 = vld [vmem:[%s1937_s4] sm:$0xff]  ;;  %v714_v37 = vld [vmem:[#allocation8 + $0xe0] sm:$0xff]  ;;  %v720_v44 = vld [vmem:[#allocation8 + $0x110] sm:$0xff] }
  0x6a   : > { %1301 = vmatpush1.bf16.msra.mxu1 %v1300_v21  ;;  %609 = vmatprep.mubr.f32.mxu0 %v1586_v5  ;;  %v1289_v38 = vpack.c.bf16 %v519_v35, %v516_v34  ;;  %v1310_v40 = vpack.c.bf16 %v714_v37, %v711_v36  ;;  %v710_v41 = vld [vmem:[#allocation8 + $0xc0] sm:$0xff]  ;;  %v713_v42 = vld [vmem:[#allocation8 + $0xd8] sm:$0xff]  ;;  %v716_v47 = vld [vmem:[#allocation8 + $0xf0] sm:$0xff]  ;;  %p1534_p0 = pneg %p1533_p13 }
  0x6b   : > { %1303 = vmatprep.subr.bf16.mxu1 %v1302_v22  ;;  %1288 = vmatprep.subr.bf16.mxu0 %v1287_v33  ;;  %v717_v43 = vld [vmem:[#allocation8 + $0xf8] sm:$0xff]  ;;  %v1312_v45 = vpack.c.bf16 %v713_v42, %v710_v41  ;;  %v719_v48 = vld [vmem:[#allocation8 + $0x108] sm:$0xff]  ;;  %v726_v51 = vld [vmem:[#allocation8 + $0x140] sm:$0xff] }
  0x6c   : > { %1290 = vmatpush1.bf16.msra.mxu0 %v1289_v38  ;;  %v1314_v46 = vpack.c.bf16 %v720_v44, %v717_v43  ;;  %v1316_v49 = vpack.c.bf16 %v719_v48, %v716_v47  ;;  %v723_v50 = vld [vmem:[#allocation8 + $0x128] sm:$0xff]  ;;  %v722_v53 = vld [vmem:[#allocation8 + $0x120] sm:$0xff]  ;;  %v725_v54 = vld [vmem:[#allocation8 + $0x138] sm:$0xff]  ;;  %p1541_p9 = pnand %p1540_p7, %p1534_p0 }
  0x6d   : > { %v1318_v52 = vpack.c.bf16 %v726_v51, %v723_v50  ;;  %v1320_v55 = vpack.c.bf16 %v725_v54, %v722_v53  ;;  %v523_v56 = vld [vmem:[%s1937_s4 + $0x38] sm:$0xff]  ;;  %v522_v57 = vld [vmem:[%s1937_s4 + $0x30] sm:$0xff]  ;;  %v729_v58 = vld [vmem:[#allocation8 + $0x158] sm:$0xff] }
  0x6e   : > { %1305 = vmatpush1.bf16.msra.mxu1 %v1304_v28  ;;  %549 = vmatprep.subr.mxu0 %v523_v56  ;;  %v732_v59 = vld [vmem:[#allocation8 + $0x170] sm:$0xff]  ;;  %v731_v62 = vld [vmem:[#allocation8 + $0x168] sm:$0xff]  ;;  %v1805_v0 = vld [vmem:[#allocation2] sm:$0xff] }
  0x6f   : > { %1307 = vmatprep.subr.bf16.mxu1 %v1306_v31  ;;  %v1322_v60 = vpack.c.bf16 %v732_v59, %v729_v58  ;;  %v728_v61 = vld [vmem:[#allocation8 + $0x150] sm:$0xff]  ;;  %v1143_v1 = vld [vmem:[%s1936_s3] ss:$0 sm:$0xff]  ;;  %v518_v2 = vld [vmem:[%s1937_s4 + $0x10] sm:$0xff] }
  0x70   : > { %550 = vmatpush1.msra.mxu0 %v522_v57  ;;  %v1324_v63 = vpack.c.bf16 %v731_v62, %v728_v61  ;;  %v521_v4 = vld [vmem:[%s1937_s4 + $0x28] sm:$0xff]  ;;  %v688_v11 = vld [vmem:[#allocation8 + $0x10] sm:$0xff]  ;;  %v691_v12 = vld [vmem:[#allocation8 + $0x28] sm:$0xff]  ;;  %v527_v61 = vlaneseq }
  0x71   : > { %1291 = vmatprep.subr.bf16.mxu0 %v1584_v3  ;;  %v1292_v9 = vpack.c.bf16 %v521_v4, %v518_v2  ;;  %v524_v13 = vld [vmem:[%s1937_s4 + $0x40] sm:$0xff]  ;;  %v1327_v14 = vpack.c.bf16 %v691_v12, %v688_v11  ;;  %v694_v15 = vld [vmem:[#allocation8 + $0x40] sm:$0xff]  ;;  %v700_v18 = vld [vmem:[#allocation8 + $0x70] sm:$0xff] }
  0x72   : > { %1309 = vmatpush1.bf16.msra.mxu1 %v1308_v39  ;;  %v697_v16 = vld [vmem:[#allocation8 + $0x58] sm:$0xff]  ;;  %v703_v19 = vld [vmem:[#allocation8 + $0x88] sm:$0xff]  ;;  %v706_v21 = vld [vmem:[#allocation8 + $0xa0] sm:$0xff]  ;;  %v528_v62 = vshrl.u32 %v527_v61, 7 }
  0x73   : > { %1311 = vmatprep.subr.bf16.mxu1 %v1310_v40  ;;  %v1330_v17 = vpack.c.bf16 %v697_v16, %v694_v15  ;;  %v1333_v20 = vpack.c.bf16 %v703_v19, %v700_v18  ;;  %v709_v22 = vld [vmem:[#allocation8 + $0xb8] sm:$0xff]  ;;  %v712_v24 = vld [vmem:[#allocation8 + $0xd0] sm:$0xff]  ;;  %v715_v25 = vld [vmem:[#allocation8 + $0xe8] sm:$0xff] }
  0x74   : > { %v1336_v23 = vpack.c.bf16 %v709_v22, %v706_v21  ;;  %v1339_v26 = vpack.c.bf16 %v715_v25, %v712_v24  ;;  %v721_v27 = vld [vmem:[#allocation8 + $0x118] sm:$0xff]  ;;  %v724_v29 = vld [vmem:[#allocation8 + $0x130] sm:$0xff]  ;;  %v727_v30 = vld [vmem:[#allocation8 + $0x148] sm:$0xff]  ;;  %v533_v2 = vsub.s32 1, %v528_v62 }
  0x75   : > { %v1345_v31 = vpack.c.bf16 %v727_v30, %v724_v29  ;;  %v730_v32 = vld [vmem:[#allocation8 + $0x160] sm:$0xff]  ;;  %v733_v33 = vld [vmem:[#allocation8 + $0x178] sm:$0xff]  ;;  %v916_v39 = vld [vmem:[%s1941_s8 + $0x10] sm:$0xff] }
  0x76   : > { %1313 = vmatpush1.bf16.msra.mxu1 %v1312_v45  ;;  %v1348_v34 = vpack.c.bf16 %v733_v33, %v730_v32  ;;  %v914_v37 = vld [vmem:[%s1941_s8] sm:$0xff]  ;;  %v915_v38 = vld [vmem:[%s1941_s8 + $0x8] sm:$0xff]  ;;  %v917_v41 = vld [vmem:[%s1941_s8 + $0x18] sm:$0xff] }
  0x77   : > { %1315 = vmatprep.subr.bf16.mxu1 %v1314_v46  ;;  %v1351_v40 = vpack.c.bf16 %v915_v38, %v914_v37  ;;  %v1354_v42 = vpack.c.bf16 %v917_v41, %v916_v39  ;;  %v918_v43 = vld [vmem:[%s1941_s8 + $0x20] sm:$0xff]  ;;  %v919_v44 = vld [vmem:[%s1941_s8 + $0x28] sm:$0xff]  ;;  %v920_v46 = vld [vmem:[%s1941_s8 + $0x30] sm:$0xff] }
  0x78   : > { %v1357_v45 = vpack.c.bf16 %v919_v44, %v918_v43  ;;  %v921_v47 = vld [vmem:[%s1941_s8 + $0x38] sm:$0xff]  ;;  %v923_v50 = vld [vmem:[%s1941_s8 + $0x48] sm:$0xff]  ;;  %v928_v58 = vld [vmem:[%s1941_s8 + $0x70] sm:$0xff] }
  0x79   : > { %v1360_v48 = vpack.c.bf16 %v921_v47, %v920_v46  ;;  %v925_v53 = vld [vmem:[%s1941_s8 + $0x58] sm:$0xff]  ;;  %v927_v56 = vld [vmem:[%s1941_s8 + $0x68] sm:$0xff]  ;;  %v734_v4 = vld [vmem:[%s1940_s7] sm:$0x7] }
  0x7a   : > { %1317 = vmatpush1.bf16.msra.mxu1 %v1316_v49  ;;  %v922_v49 = vld [vmem:[%s1941_s8 + $0x40] sm:$0xff]  ;;  %v929_v59 = vld [vmem:[%s1941_s8 + $0x78] sm:$0xff] }
  0x7b   : > { %1319 = vmatprep.subr.bf16.mxu1 %v1318_v52  ;;  %v1363_v51 = vpack.c.bf16 %v923_v50, %v922_v49  ;;  %v924_v52 = vld [vmem:[%s1941_s8 + $0x50] sm:$0xff] }
  0x7c   : > { %v1366_v54 = vpack.c.bf16 %v925_v53, %v924_v52 }
  0x7e   : > { %1321 = vmatpush1.bf16.msra.mxu1 %v1320_v55  ;;  %v926_v55 = vld [vmem:[%s1941_s8 + $0x60] sm:$0xff] }
  0x7f   : > { %1323 = vmatprep.subr.bf16.mxu1 %v1322_v60  ;;  %v1369_v57 = vpack.c.bf16 %v927_v56, %v926_v55  ;;  %v1372_v60 = vpack.c.bf16 %v929_v59, %v928_v58 }
  0x82   : > { %1325 = vmatpush1.bf16.msra.mxu1 %v1324_v63  ;;  %v529_v63 = vsub.s32 0, %v528_v62 }
  0x83   : > { %1350 = vmatprep.subr.bf16.mxu1 %v1584_v3 }
  0x85   : > { %816 = vmatmul.mubr.f32.vlgmr.msra.gmra.mrb[0].mxu1 %v1805_v0 }
  0x86   : > { %1281 = vmatprep.mubr.msk.f32.mxu1 %vm1585_vm0, %v1586_v5  ;;  %1352 = vmatpush3.bf16.msra.mxu1 %v1351_v40  ;;  %v1149_v40 = vld [vmem:[%s1942_s9] ss:$0 sm:$0xff] }
  0x87   : > { %1353 = vmatprep.subr.bf16.mxu1 %v1584_v3 }
  0x8a   : > { %1355 = vmatpush3.bf16.msra.mxu1 %v1354_v42 }
  0x8b   : > { %1356 = vmatprep.subr.bf16.mxu1 %v1584_v3 }
  0x8e   : > { %1358 = vmatpush3.bf16.msra.mxu1 %v1357_v45 }
  0x8f   : > { %1359 = vmatprep.subr.bf16.mxu1 %v1584_v3 }
  0x92   : > { %1361 = vmatpush3.bf16.msra.mxu1 %v1360_v48 }
  0x93   : > { %1362 = vmatprep.subr.bf16.mxu1 %v1584_v3 }
  0x96   : > { %1364 = vmatpush3.bf16.msra.mxu1 %v1363_v51 }
  0x97   : > { %1365 = vmatprep.subr.bf16.mxu1 %v1584_v3 }
  0x9a   : > { %1367 = vmatpush3.bf16.msra.mxu1 %v1366_v54 }
  0x9b   : > { %1368 = vmatprep.subr.bf16.mxu1 %v1584_v3 }
  0x9e   : > { %1370 = vmatpush3.bf16.msra.mxu1 %v1369_v57 }
  0x9f   : > { %1371 = vmatprep.subr.bf16.mxu1 %v1584_v3 }
  0xa2   : > { %1373 = vmatpush3.bf16.msra.mxu1 %v1372_v60 }
 0x13c   : > { %v511_v6 = vpop.f32.mrb[0].mxu0 }
 0x13d   : > { %v512_v7 = vadd.f32 %v1143_v1, %v511_v6  ;;  %v1204_v8 = vpop.f32.mrb[1].mxu0  ;;  %v525_v1 = vld [vmem:[%s1938_s5] sm:$0x7] }
 0x13e   : > { %v530_v6 = vrot.slane %v525_v1, %v529_v63  ;;  %v739_v8 = vrot.slane %v734_v4, %v529_v63 }
 0x13f   : > { %v515_v10 = vmax.f32 %v512_v7, 0.0  ;;  %v534_v7 = vrot.slane %v525_v1, %v533_v2 }
 0x141   : > { %1145 = vmatmul.mubr.msk.f32.vlgmr.msra.gmra.mrb[2].mxu0 %vm441_vm1, %v515_v10 }
 0x142   : > { %1293 = vmatpush3.bf16.msra.mxu0 %v1292_v9  ;;  %1211 = vmatprep.mubr.msk.f32.mxu0 %vm1585_vm0, %v1586_v5 }
 0x143   : > { %1209 = vmatprep.subr.mxu0 %v1586_v5 }
 0x146   : > { %1210 = vmatpush3.msra.mxu0 %v524_v13 }
 0x147   : > { %1212 = vmatmul.mubr.msk.f32.vlgmr.msra.gmra.mrb[4].mxu0 %vm441_vm1, %v515_v10  ;;  %1326 = vmatprep.subr.bf16.mxu0 %v1584_v3  ;;  %v743_v10 = vrot.slane %v734_v4, %v533_v2 }
 0x148   : > { %1328 = vmatpush3.bf16.msra.mxu0 %v1327_v14  ;;  %1246 = vmatprep.mubr.msk.f32.mxu0 %vm1585_vm0, %v1586_v5  ;;  %v718_v5 = vld [vmem:[#allocation8 + $0x100] sm:$0xff] }
 0x149   : > { %1329 = vmatprep.subr.bf16.mxu0 %v1584_v3  ;;  %v1342_v28 = vpack.c.bf16 %v721_v27, %v718_v5 }
 0x14c   : > { %1331 = vmatpush3.bf16.msra.mxu0 %v1330_v17 }
 0x14d   : > { %1332 = vmatprep.subr.bf16.mxu0 %v1584_v3 }
 0x150   : > { %1334 = vmatpush3.bf16.msra.mxu0 %v1333_v20 }
 0x151   : > { %1335 = vmatprep.subr.bf16.mxu0 %v1584_v3 }
 0x154   : > { %1337 = vmatpush3.bf16.msra.mxu0 %v1336_v23  ;;  %v537_v23 = vsub.s32 2, %v528_v62 }
 0x155   : > { %1338 = vmatprep.subr.bf16.mxu0 %v1584_v3 }
 0x156   : > { %v747_v25 = vrot.slane %v734_v4, %v537_v23 }
 0x158   : > { %1340 = vmatpush3.bf16.msra.mxu0 %v1339_v26  ;;  %v817_v35 = vpop.f32.mrb[0].mxu1  ;;  %v538_v26 = vrot.slane %v525_v1, %v537_v23 }
 0x159   : > { %1341 = vmatprep.subr.bf16.mxu0 %v1584_v3  ;;  %v819_v36 = vpop.f32.mrb[1].mxu1 }
 0x15c   : > { %1343 = vmatpush3.bf16.msra.mxu0 %v1342_v28 }
 0x15d   : > { %1344 = vmatprep.subr.bf16.mxu0 %v1584_v3 }
 0x160   : > { %1346 = vmatpush3.bf16.msra.mxu0 %v1345_v31 }
 0x161   : > { %1347 = vmatprep.subr.bf16.mxu0 %v1584_v3 }
 0x164   : > { %1349 = vmatpush3.bf16.msra.mxu0 %v1348_v34 }
 0x167   : > { %1247 = vmatmul.mubr.f32.vlgmr.msra.gmra.mrb[6].mxu0 %v1805_v0 }
 0x214   : > { %v611_v9 = vpop.f32.mrb[2].mxu0 }
 0x215   : > { %v612_v11 = vadd.f32 %v611_v9, %v530_v6  ;;  %v613_v3 = vpop.f32.mrb[3].mxu0 }
 0x216   : > { %v614_v12 = vadd.f32 %v613_v3, %v534_v7 }
 0x217   : > { %v1375_v13 = vadd.f32 %v739_v8, %v612_v11 }
 0x218   : > { %v1378_v14 = vadd.f32 %v743_v10, %v614_v12 }
 0x219   : > { %v1376_v15 = vadd.f32 %v1375_v13, %v817_v35 }
 0x21a   : > { %v682_v16 = vpop.f32.mrb[4].mxu0  ;;  %v1379_v17 = vadd.f32 %v1378_v14, %v819_v36 }
 0x21b   : > { %v1213_v18 = vpop.f32.mrb[5].mxu0  ;;  %v1147_v19 = vmul.f32 -1.442695, %v1376_v15  ;;  %v683_v31 = vadd.f32 %v682_v16, %v538_v26 }
 0x21c   : > { %v1148_v20 = vmul.f32 -1.442695, %v1379_v17 }
 0x21d   : > { %1433 = vpow2.f32 %v1147_v19 }
 0x21e   : > { %1435 = vpow2.f32 %v1148_v20 }
 0x227   : > { %v1434_v21 = vpop.eup %1433 }
 0x228   : > { %v896_v22 = vadd.f32 1.0, %v1434_v21  ;;  %v1436_v24 = vpop.eup %1435 }
 0x229   : > { %v903_v5 = vadd.f32 1.0, %v1436_v24 }
 0x22a   : > { %1437 = vrcp.f32 %v896_v22 }
 0x22b   : > { %1439 = vrcp.f32 %v903_v5 }
 0x234   : > { %v1438_v30 = vpop.eup %1437 }
 0x235   : > { %v1440_v34 = vpop.eup %1439 }
 0x236   : > { %v909_v35 = vsub.f32 1.0, %v1440_v34  ;;  %v911_v38 = vmul.f32 %v1440_v34, %v1805_v0 }
 0x23a   : > { %v888_v27 = vpop.f32.mrb[6].mxu0 }
 0x23b   : > { %v889_v28 = vadd.f32 %v888_v27, %v747_v25  ;;  %v1248_v29 = vpop.f32.mrb[7].mxu0 }
 0x23d   : > { %v906_v32 = vmul.f32 %v1438_v30, %v889_v28 }
 0x23f   : > { %v907_v33 = vadd.f32 %v906_v32, %v683_v31 }
 0x241   : > { %1441 = vtanh.f32 %v907_v33 }
 0x24b   : > { %v1442_v36 = vpop.eup %1441 }
 0x24c   : > { %v910_v37 = vmul.f32 %v1442_v36, %v909_v35 }
 0x24e   : > { %v912_v39 = vadd.f32 %v911_v38, %v910_v37 }
 0x250   : > { %913 = vst [vmem:[#allocation2] sm:$0xff] %v912_v39  ;;  %1282 = vmatmul.mubr.f32.vlgmr.msra.gmra.mrb[2].mxu1 %v912_v39  ;;  %1020 = vst [vmem:[#allocation9] sm:$0xff] %v912_v39 }
 0x323   : > { %v1003_v41 = vpop.f32.mrb[2].mxu1 }
 0x324   : > { %v1004_v42 = vadd.f32 %v1149_v40, %v1003_v41  ;;  %v1283_v43 = vpop.f32.mrb[3].mxu1 }
 0x326   : > { %v1008_v44 = vsel %vm1007_vm2, %v1004_v42, -inf }
 0x327   : > { %1009 = vmax.xlane.f32.xlu0 %v1008_v44 }
 0x3b4   : > { %v1010_v45 = vpop.xlane.xlu0 %1009 }
 0x3b5   : > { %v1011_v46 = vsub.f32 %v1004_v42, %v1010_v45 }
 0x3b7   : > { %v1012_v0 = vmul.f32 1.442695, %v1011_v46 }
 0x3b9   : > { %1443 = vpow2.f32 %v1012_v0 }
 0x3c3   : > { %v1444_v47 = vpop.eup %1443 }
 0x3c4   : > { %v1014_v48 = vsel %vm1007_vm2, %v1444_v47, 0.0 }
 0x3c5   : > { %1015 = vadd.xlane.f32.xlu0 %v1014_v48 }
 0x3c6   : > { %1544 = shalt.err (!%p1541_p9)
}
 0x3c7   : > { %s1545_s27 = scalar_lea.hbm %s1944_s11, 128 }
 0x3c8   : > { %p1546_p2 = scmp.ne.s32.totalorder %s1944_s11, %s1545_s27  ;;  %p1551_p12 = scmp.lt.u32.totalorder %s1545_s27, %s1944_s11 }
 0x3ca   : > { %p1547_p10 = pnand %p1546_p2, %p1412_p3 }
 0x3cc   : > { %p1548_p11 = pneg %p1547_p10 }
 0x3ce   : > { %p1553_p8 = pnand %p1551_p12, %p1548_p11 }
 0x3d0   : > { %1556 = shalt.err (!%p1553_p8)
}
 0x3d1   : > { %1393 = dma.vmem_to_hbm [thread:$0]  (%p1412_p3), %s1036_s13, 128, %s1944_s11, [#allocation5]  }
 0x452   : > { %v1016_v49 = vpop.xlane.xlu0 %1015 }
 0x453   : > { %1445 = vrcp.f32 %v1016_v49 }
 0x45d   : > { %v1446_v50 = vpop.eup %1445 }
 0x45e   : > { %v1018_v51 = vmul.f32 %v1446_v50, %v1444_v47 }
 0x460   : > { %1019 = vst.msk [vmem:[%s1773_s28] sm:$0xff] %vm1007_vm2, %v1018_v51 }
 0x461   : > { %1570 = dma.done.wait (%p1412_p3), [#allocation5], 128  }
 0x462   : > { %1572 = vsyncadd (%p1412_p3), [#allocation5], 4294967168 }
 0x463 PF: > { %s25_s17 = sadd.s32 1, %s1575_s17  }
 0x464   : > { %p22_p4 = scmp.ge.s32.totalorder %s25_s17, 10  }
 0x466   :  { %24 = sbr.rel (!%p22_p4) target bundleno = 3 (0x3), region = 116 }
 0x46d   :  { %1055 = vsyncpa [#allocation4], 1 }
 0x46e   :  { %1057 = vsyncpa [#allocation4 + $0x1], 1 }
 0x46f   :  { %1058 = vsyncpa [#allocation7], 1 }
 0x470   :  { %1059 = vsyncpa [#allocation5], 1 }
 0x471   :  { %1061 = vsyncpa [#allocation5 + $0x1], 1 }

</bundles_post_ra>
